<compile_context>
chip_gen: v7x
topology: tpu7x:2x2x1
jax: 0.10.0
libtpu: 0.0.40
codegen_flags: <defaults>
</compile_context>

<pallas_src>
import functools

import jax
import jax.numpy as jnp
from jax.experimental import pallas as pl
from jax.experimental.pallas import tpu as pltpu


def _round_up(n, m):
    return ((n + m - 1) // m) * m


# ----------------------------------------------------------------------------
# Fused kernel: replicate input across heads (VMEM scratch), run all BE layers
# as single row-dense matmuls, then k prediction heads + mean over heads.
# ----------------------------------------------------------------------------
def _fused_tabm_kernel(n_be, k, B, x_ref, *refs):
    """Argument layout (after x_ref):
         inputs : per BE layer li: r_rows, s_rows, b_rows, w   (4*n_be refs)
                  then w_heads (k, dh, dout), b_heads (k, dout)
         outputs: out (B, dout)
         scratch: xrep VMEM (k*B, din)
       B here is the padded batch (multiple of 8), so all sublane slices below
       are 8-aligned.
    """
    wh_ref = refs[4 * n_be]
    bh_ref = refs[4 * n_be + 1]
    out_ref = refs[4 * n_be + 2]
    xrep_ref = refs[4 * n_be + 3]

    # Replicate the shared input across the k ensemble heads inside VMEM.
    # Head-major rows: row i*B + b  <->  (head i, batch b).
    x = x_ref[...]                                   # (B, din)
    for i in range(k):                               # unrolled; k tiny aligned stores
        xrep_ref[i * B:(i + 1) * B, :] = x
    X = xrep_ref[...]                                # (k*B, din)

    # NonLinearBE + ReLU layers.  Adapters already tanh'd and row-expanded to
    # (k*B, d) by the wrapper, so each layer is ONE matmul on the MXU.
    # Dropout = identity (eval mode).
    for li in range(n_be):
        r_rows = refs[4 * li][...]                   # (k*B, din_l)
        s_rows = refs[4 * li + 1][...]               # (k*B, dout_l)
        b_rows = refs[4 * li + 2][...]               # (k*B, dout_l)
        w = refs[4 * li + 3][...]                    # (din_l, dout_l)
        h = jnp.dot(X * r_rows, w, preferred_element_type=jnp.float32)
        X = jnp.maximum(h * s_rows + b_rows, 0.0)

    # k prediction heads + mean over heads, accumulated in f32 vregs.
    dout = out_ref.shape[-1]
    acc = jnp.zeros((B, dout), jnp.float32)
    for i in range(k):                               # unrolled; k small dots
        acc = acc + jnp.dot(X[i * B:(i + 1) * B, :], wh_ref[i],
                            preferred_element_type=jnp.float32)
    bh_mean = jnp.mean(bh_ref[...], axis=0, keepdims=True)     # (1, dout)
    out_ref[...] = acc * (1.0 / k) + bh_mean


# ----------------------------------------------------------------------------
# Parameters (raw, PyTorch-like) and one-time kernel-ready preparation.
# ----------------------------------------------------------------------------
def init_params(key, layers_shapes, k, amplitude=1.0):
    params = {"be": [], "heads": None}
    n_be = len(layers_shapes) - 2
    for li in range(n_be):
        din, dout = layers_shapes[li], layers_shapes[li + 1]
        key, kw, kr, ks = jax.random.split(key, 4)
        w = jax.random.normal(kw, (din, dout), jnp.float32) / jnp.sqrt(din)
        if li == 0:
            # init='ones' for the first NonLinearBE layer
            r = jnp.ones((k, din), jnp.float32)
            s = jnp.ones((k, dout), jnp.float32)
        else:
            # init='uniform' with given amplitude
            r = jax.random.uniform(kr, (k, din), jnp.float32, -amplitude, amplitude)
            s = jax.random.uniform(ks, (k, dout), jnp.float32, -amplitude, amplitude)
        b = jnp.zeros((k, dout), jnp.float32)
        params["be"].append((r, s, b, w))
    dh, do = layers_shapes[-2], layers_shapes[-1]
    key, kw, kb = jax.random.split(key, 3)
    w_heads = jax.random.normal(kw, (k, dh, do), jnp.float32) / jnp.sqrt(dh)
    b_heads = jax.random.normal(kb, (k, do), jnp.float32) * 0.01
    params["heads"] = (w_heads, b_heads)
    return params


def prepare_params(params, B):
    """One-time prep: apply tanh to the adapters and expand (k, d) adapters /
    biases to row-broadcast (k*B_pad, d), so every BE layer becomes a single
    (k*B_pad, din) @ (din, dout) matmul inside the fused kernel.  B is padded
    up to a multiple of 8 so all in-kernel sublane slices are aligned."""
    B_pad = _round_up(max(B, 1), 8)
    be = []
    for (r, s, b, w) in params["be"]:
        r_rows = jnp.repeat(jnp.tanh(r), B_pad, axis=0)       # (k*B_pad, din)
        s_rows = jnp.repeat(jnp.tanh(s), B_pad, axis=0)       # (k*B_pad, dout)
        b_rows = jnp.repeat(b, B_pad, axis=0)                 # (k*B_pad, dout)
        be.append((r_rows, s_rows, b_rows, w.astype(jnp.float32)))
    w_heads, b_heads = params["heads"]
    return {"be": be,
            "heads": (w_heads.astype(jnp.float32), b_heads.astype(jnp.float32))}


# ----------------------------------------------------------------------------
# Forward: one pallas_call, no grid, everything VMEM-resident.
# (At realistic TabM sizes, tile the k*B row axis with a 'parallel' grid axis
#  and keep weights resident; not needed at these shapes.)
# ----------------------------------------------------------------------------
@jax.jit
def nonlinear_tabm_forward(x, prepared):
    be = prepared["be"]
    w_heads, b_heads = prepared["heads"]
    n_be = len(be)
    k = w_heads.shape[0]
    B, din = x.shape
    dout = w_heads.shape[-1]
    B_pad = be[0][0].shape[0] // k          # padded batch used for row expansion

    x_pad = x.astype(jnp.float32)
    if B_pad != B:
        x_pad = jnp.pad(x_pad, ((0, B_pad - B), (0, 0)))

    args = [x_pad]
    for (r_rows, s_rows, b_rows, w) in be:
        args.extend([r_rows, s_rows, b_rows, w])
    args.extend([w_heads, b_heads])

    kernel = functools.partial(_fused_tabm_kernel, n_be, k, B_pad)
    out_pad = pl.pallas_call(
        kernel,
        out_shape=jax.ShapeDtypeStruct((B_pad, dout), jnp.float32),
        in_specs=[pl.BlockSpec(memory_space=pltpu.MemorySpace.VMEM)
                  for _ in args],
        out_specs=pl.BlockSpec(memory_space=pltpu.MemorySpace.VMEM),
        scratch_shapes=[pltpu.VMEM((k * B_pad, din), jnp.float32)],
    )(*args)
    return out_pad[:B]


# Pure-JAX reference (same semantics) for correctness check.
def reference_forward(x, params, k):
    X = jnp.broadcast_to(x[None, :, :], (k,) + x.shape).astype(jnp.float32)
    for (r, s, b, w) in params["be"]:
        h = jnp.einsum("kbi,io->kbo", X * jnp.tanh(r)[:, None, :], w)
        h = h * jnp.tanh(s)[:, None, :] + b[:, None, :]
        X = jnp.maximum(h, 0.0)
    w_heads, b_heads = params["heads"]
    preds = jnp.einsum("kbh,kho->kbo", X, w_heads) + b_heads[:, None, :]
    return preds.mean(axis=0)


if __name__ == "__main__":
    key = jax.random.PRNGKey(0)
    k = 4
    layers_shapes = [16, 32, 32, 4]     # d_in=16, hidden=32, hidden=32, d_out=4
    B = 2                               # padded to 8 internally

    kx, kp = jax.random.split(key)
    x = jax.random.normal(kx, (B, layers_shapes[0]), jnp.float32)
    params = init_params(kp, layers_shapes, k)
    prepared = prepare_params(params, B)   # tanh + row-expansion, done once

    out = nonlinear_tabm_forward(x, prepared)
    out = jax.block_until_ready(out)

    ref = reference_forward(x, params, k)
    assert out.shape == (B, layers_shapes[-1]), out.shape
    assert jnp.allclose(out, ref, atol=1e-4, rtol=1e-4), (out, ref)

    print("KERNEL_OK")
</pallas_src>

<mosaic_0001>
module attributes {stable_mosaic.version = 11 : i64} {
  func.func @_fused_tabm_kernel(%arg0: memref<8x16xf32, #tpu.memory_space<vmem>>, %arg1: memref<32x16xf32, #tpu.memory_space<vmem>>, %arg2: memref<32x32xf32, #tpu.memory_space<vmem>>, %arg3: memref<32x32xf32, #tpu.memory_space<vmem>>, %arg4: memref<16x32xf32, #tpu.memory_space<vmem>>, %arg5: memref<32x32xf32, #tpu.memory_space<vmem>>, %arg6: memref<32x32xf32, #tpu.memory_space<vmem>>, %arg7: memref<32x32xf32, #tpu.memory_space<vmem>>, %arg8: memref<32x32xf32, #tpu.memory_space<vmem>>, %arg9: memref<4x32x4xf32, #tpu.memory_space<vmem>>, %arg10: memref<4x4xf32, #tpu.memory_space<vmem>>, %arg11: memref<8x4xf32, #tpu.memory_space<vmem>>, %arg12: memref<32x16xf32, #tpu.memory_space<vmem>>) attributes {dimension_semantics = [], scalar_prefetch = 0 : i64, scratch_operands = 1 : i64, tpu.core_type = #tpu.core_type<tc>} {
    %c0 = arith.constant 0 : index
    %c0_0 = arith.constant 0 : index
    %0 = vector.load %arg0[%c0, %c0_0] : memref<8x16xf32, #tpu.memory_space<vmem>>, vector<8x16xf32>
    %c0_1 = arith.constant 0 : index
    %c0_2 = arith.constant 0 : index
    %1 = vector.load %arg12[%c0_1, %c0_2] : memref<32x16xf32, #tpu.memory_space<vmem>>, vector<8x16xf32>
    tpu.vector_store %arg12[%c0_1, %c0_2], %0 {strides = array<i32>} : memref<32x16xf32, #tpu.memory_space<vmem>>, vector<8x16xf32>,
    %c8 = arith.constant 8 : index
    %c0_3 = arith.constant 0 : index
    %2 = vector.load %arg12[%c8, %c0_3] : memref<32x16xf32, #tpu.memory_space<vmem>>, vector<8x16xf32>
    tpu.vector_store %arg12[%c8, %c0_3], %0 {strides = array<i32>} : memref<32x16xf32, #tpu.memory_space<vmem>>, vector<8x16xf32>,
    %c16 = arith.constant 16 : index
    %c0_4 = arith.constant 0 : index
    %3 = vector.load %arg12[%c16, %c0_4] : memref<32x16xf32, #tpu.memory_space<vmem>>, vector<8x16xf32>
    tpu.vector_store %arg12[%c16, %c0_4], %0 {strides = array<i32>} : memref<32x16xf32, #tpu.memory_space<vmem>>, vector<8x16xf32>,
    %c24 = arith.constant 24 : index
    %c0_5 = arith.constant 0 : index
    %4 = vector.load %arg12[%c24, %c0_5] : memref<32x16xf32, #tpu.memory_space<vmem>>, vector<8x16xf32>
    tpu.vector_store %arg12[%c24, %c0_5], %0 {strides = array<i32>} : memref<32x16xf32, #tpu.memory_space<vmem>>, vector<8x16xf32>,
    %c0_6 = arith.constant 0 : index
    %c0_7 = arith.constant 0 : index
    %5 = vector.load %arg12[%c0_6, %c0_7] : memref<32x16xf32, #tpu.memory_space<vmem>>, vector<32x16xf32>
    %c0_8 = arith.constant 0 : index
    %c0_9 = arith.constant 0 : index
    %6 = vector.load %arg1[%c0_8, %c0_9] : memref<32x16xf32, #tpu.memory_space<vmem>>, vector<32x16xf32>
    %c0_10 = arith.constant 0 : index
    %c0_11 = arith.constant 0 : index
    %7 = vector.load %arg2[%c0_10, %c0_11] : memref<32x32xf32, #tpu.memory_space<vmem>>, vector<32x32xf32>
    %c0_12 = arith.constant 0 : index
    %c0_13 = arith.constant 0 : index
    %8 = vector.load %arg3[%c0_12, %c0_13] : memref<32x32xf32, #tpu.memory_space<vmem>>, vector<32x32xf32>
    %c0_14 = arith.constant 0 : index
    %c0_15 = arith.constant 0 : index
    %9 = vector.load %arg4[%c0_14, %c0_15] : memref<16x32xf32, #tpu.memory_space<vmem>>, vector<16x32xf32>
    %10 = arith.mulf %5, %6 : vector<32x16xf32>
    %cst = arith.constant dense<0.000000e+00> : vector<32x32xf32>
    %11 = tpu.matmul %10, %9, %cst {dimension_numbers = #tpu.dot_dimension_numbers<[1], [0], [0], [1], [0, 0, 1, 1], [], []>} : vector<32x16xf32>, vector<16x32xf32>, vector<32x32xf32> -> vector<32x32xf32>
    %12 = arith.mulf %11, %7 : vector<32x32xf32>
    %13 = arith.addf %12, %8 : vector<32x32xf32>
    %cst_16 = arith.constant 0.000000e+00 : f32
    %14 = vector.broadcast %cst_16 : f32 to vector<32x32xf32>
    %15 = arith.maximumf %13, %14 : vector<32x32xf32>
    %c0_17 = arith.constant 0 : index
    %c0_18 = arith.constant 0 : index
    %16 = vector.load %arg5[%c0_17, %c0_18] : memref<32x32xf32, #tpu.memory_space<vmem>>, vector<32x32xf32>
    %c0_19 = arith.constant 0 : index
    %c0_20 = arith.constant 0 : index
    %17 = vector.load %arg6[%c0_19, %c0_20] : memref<32x32xf32, #tpu.memory_space<vmem>>, vector<32x32xf32>
    %c0_21 = arith.constant 0 : index
    %c0_22 = arith.constant 0 : index
    %18 = vector.load %arg7[%c0_21, %c0_22] : memref<32x32xf32, #tpu.memory_space<vmem>>, vector<32x32xf32>
    %c0_23 = arith.constant 0 : index
    %c0_24 = arith.constant 0 : index
    %19 = vector.load %arg8[%c0_23, %c0_24] : memref<32x32xf32, #tpu.memory_space<vmem>>, vector<32x32xf32>
    %20 = arith.mulf %15, %16 : vector<32x32xf32>
    %cst_25 = arith.constant dense<0.000000e+00> : vector<32x32xf32>
    %21 = tpu.matmul %20, %19, %cst_25 {dimension_numbers = #tpu.dot_dimension_numbers<[1], [0], [0], [1], [0, 0, 1, 1], [], []>} : vector<32x32xf32>, vector<32x32xf32>, vector<32x32xf32> -> vector<32x32xf32>
    %22 = arith.mulf %21, %17 : vector<32x32xf32>
    %23 = arith.addf %22, %18 : vector<32x32xf32>
    %cst_26 = arith.constant 0.000000e+00 : f32
    %24 = vector.broadcast %cst_26 : f32 to vector<32x32xf32>
    %25 = arith.maximumf %23, %24 : vector<32x32xf32>
    %cst_27 = arith.constant 0.000000e+00 : f32
    %26 = vector.broadcast %cst_27 : f32 to vector<8x4xf32>
    %27 = vector.extract_strided_slice %25 {offsets = [0, 0], sizes = [8, 32], strides = [1, 1]} : vector<32x32xf32> to vector<8x32xf32>
    %c0_28 = arith.constant 0 : index
    %c0_29 = arith.constant 0 : index
    %c0_30 = arith.constant 0 : index
    %28 = vector.load %arg9[%c0_28, %c0_29, %c0_30] : memref<4x32x4xf32, #tpu.memory_space<vmem>>, vector<1x32x4xf32>
    %29 = vector.shape_cast %28 : vector<1x32x4xf32> to vector<32x4xf32>
    %cst_31 = arith.constant dense<0.000000e+00> : vector<8x4xf32>
    %30 = tpu.matmul %27, %29, %cst_31 {dimension_numbers = #tpu.dot_dimension_numbers<[1], [0], [0], [1], [0, 0, 1, 1], [], []>} : vector<8x32xf32>, vector<32x4xf32>, vector<8x4xf32> -> vector<8x4xf32>
    %31 = arith.addf %26, %30 : vector<8x4xf32>
    %32 = vector.extract_strided_slice %25 {offsets = [8, 0], sizes = [8, 32], strides = [1, 1]} : vector<32x32xf32> to vector<8x32xf32>
    %c1 = arith.constant 1 : index
    %c0_32 = arith.constant 0 : index
    %c0_33 = arith.constant 0 : index
    %33 = vector.load %arg9[%c1, %c0_32, %c0_33] : memref<4x32x4xf32, #tpu.memory_space<vmem>>, vector<1x32x4xf32>
    %34 = vector.shape_cast %33 : vector<1x32x4xf32> to vector<32x4xf32>
    %cst_34 = arith.constant dense<0.000000e+00> : vector<8x4xf32>
    %35 = tpu.matmul %32, %34, %cst_34 {dimension_numbers = #tpu.dot_dimension_numbers<[1], [0], [0], [1], [0, 0, 1, 1], [], []>} : vector<8x32xf32>, vector<32x4xf32>, vector<8x4xf32> -> vector<8x4xf32>
    %36 = arith.addf %31, %35 : vector<8x4xf32>
    %37 = vector.extract_strided_slice %25 {offsets = [16, 0], sizes = [8, 32], strides = [1, 1]} : vector<32x32xf32> to vector<8x32xf32>
    %c2 = arith.constant 2 : index
    %c0_35 = arith.constant 0 : index
    %c0_36 = arith.constant 0 : index
    %38 = vector.load %arg9[%c2, %c0_35, %c0_36] : memref<4x32x4xf32, #tpu.memory_space<vmem>>, vector<1x32x4xf32>
    %39 = vector.shape_cast %38 : vector<1x32x4xf32> to vector<32x4xf32>
    %cst_37 = arith.constant dense<0.000000e+00> : vector<8x4xf32>
    %40 = tpu.matmul %37, %39, %cst_37 {dimension_numbers = #tpu.dot_dimension_numbers<[1], [0], [0], [1], [0, 0, 1, 1], [], []>} : vector<8x32xf32>, vector<32x4xf32>, vector<8x4xf32> -> vector<8x4xf32>
    %41 = arith.addf %36, %40 : vector<8x4xf32>
    %42 = vector.extract_strided_slice %25 {offsets = [24, 0], sizes = [8, 32], strides = [1, 1]} : vector<32x32xf32> to vector<8x32xf32>
    %c3 = arith.constant 3 : index
    %c0_38 = arith.constant 0 : index
    %c0_39 = arith.constant 0 : index
    %43 = vector.load %arg9[%c3, %c0_38, %c0_39] : memref<4x32x4xf32, #tpu.memory_space<vmem>>, vector<1x32x4xf32>
    %44 = vector.shape_cast %43 : vector<1x32x4xf32> to vector<32x4xf32>
    %cst_40 = arith.constant dense<0.000000e+00> : vector<8x4xf32>
    %45 = tpu.matmul %42, %44, %cst_40 {dimension_numbers = #tpu.dot_dimension_numbers<[1], [0], [0], [1], [0, 0, 1, 1], [], []>} : vector<8x32xf32>, vector<32x4xf32>, vector<8x4xf32> -> vector<8x4xf32>
    %46 = arith.addf %41, %45 : vector<8x4xf32>
    %c0_41 = arith.constant 0 : index
    %c0_42 = arith.constant 0 : index
    %47 = vector.load %arg10[%c0_41, %c0_42] : memref<4x4xf32, #tpu.memory_space<vmem>>, vector<4x4xf32>
    %cst_43 = arith.constant dense<0.000000e+00> : vector<4xf32>
    %48 = vector.multi_reduction <add>, %47, %cst_43 [0] : vector<4x4xf32> to vector<4xf32>
    %49 = vector.shape_cast %48 : vector<4xf32> to vector<1x4xf32>
    %cst_44 = arith.constant 4.000000e+00 : f32
    %50 = vector.broadcast %cst_44 : f32 to vector<1x4xf32>
    %51 = arith.divf %49, %50 : vector<1x4xf32>
    %cst_45 = arith.constant 2.500000e-01 : f32
    %52 = vector.broadcast %cst_45 : f32 to vector<8x4xf32>
    %53 = arith.mulf %46, %52 : vector<8x4xf32>
    %54 = vector.broadcast %51 : vector<1x4xf32> to vector<8x4xf32>
    %55 = arith.addf %53, %54 : vector<8x4xf32>
    %c0_46 = arith.constant 0 : index
    %c0_47 = arith.constant 0 : index
    %56 = vector.load %arg11[%c0_46, %c0_47] : memref<8x4xf32, #tpu.memory_space<vmem>>, vector<8x4xf32>
    tpu.vector_store %arg11[%c0_46, %c0_47], %55 {strides = array<i32>} : memref<8x4xf32, #tpu.memory_space<vmem>>, vector<8x4xf32>,
    return
  }
}

</mosaic_0001>

<bundles_post_ra>
// kernel: nonlinear_tabm_forward.1
= control target key start
LH: loop header
LB: loop body
LE: loop exit
PB: predicated region body
PF: predicated region fallthrough
CT: control target
= control target key end

     0   :  { %16 = vsyncpa [#allocation4], 0  ;;  %s849_s17 = smov [#allocation3]   ;;  %s1096_s0 = inlined_call_operand.vmem [shape: f32[8,16], index: 0, kind: input, shape index: {}]   ;;  %s1097_s1 = inlined_call_operand.vmem [shape: f32[32,16], index: 1, kind: input, shape index: {}]   ;;  %s1098_s2 = inlined_call_operand.vmem [shape: f32[32,32], index: 2, kind: input, shape index: {}]   ;;  %s1099_s3 = inlined_call_operand.vmem [shape: f32[32,32], index: 3, kind: input, shape index: {}]   ;;  %s1100_s4 = inlined_call_operand.hbm [shape: f32[16,32], index: 4, kind: input, shape index: {}]   ;;  %s1101_s5 = inlined_call_operand.vmem [shape: f32[32,32], index: 5, kind: input, shape index: {}]   ;;  %s1102_s6 = inlined_call_operand.vmem [shape: f32[32,32], index: 6, kind: input, shape index: {}]   ;;  %s1103_s7 = inlined_call_operand.vmem [shape: f32[32,32], index: 7, kind: input, shape index: {}]   ;;  %s1104_s8 = inlined_call_operand.vmem [shape: f32[32,32], index: 8, kind: input, shape index: {}]   ;;  %s1105_s9 = inlined_call_operand.vmem [shape: f32[4,32,4], index: 9, kind: input, shape index: {}]   ;;  %s1106_s10 = inlined_call_operand.vmem [shape: f32[4,4], index: 10, kind: input, shape index: {}]   ;;  %s1107_s11 = inlined_call_operand.vmem [shape: f32[8,4], index: 11, kind: output, shape index: {}]  }
   0x1   :  { %s30_s18 = sshll.u32 %s849_s17, 4  ;;  %s825_s21 = scalar_lea.hbm %s1100_s4, 256  ;;  %s31_s18 = int_to_ptr.vmem [resolvable:$true] %s30_s18 }
   0x2   :  { %p826_p0 = scmp.ne.s32.totalorder %s1100_s4, %s825_s21  ;;  %p829_p1 = scmp.lt.u32.totalorder %s825_s21, %s1100_s4 }
   0x4   :  { %p831_p2 = pnand %p829_p1, %p826_p0 }
   0x6   :  { %834 = shalt.err (!%p831_p2)
}
   0x7   :  { %s835_s26 = scalar_lea.vmem %s31_s18, 256  ;;  %p840_p4 = scmp.lt.s32.totalorder %s31_s18, %s31_s18 }
   0x8   :  { %p836_p3 = scmp.ne.s32.totalorder %s31_s18, %s835_s26  ;;  %p841_p5 = scmp.lt.s32.totalorder %s835_s26, %s835_s26 }
   0xa   :  { %p842_p6 = por %p841_p5, %p840_p4 }
   0xc   :  { %p843_p7 = pnand %p842_p6, %p836_p3 }
   0xe   :  { %846 = shalt.err (!%p843_p7)
}
   0xf   :  { %s850_s27 = smov 128   ;;  %s851_s28 = smov 8  }
  0x10   :  { %36 = dma.hbm_to_vmem [thread:$0]  %s1100_s4, 256, %s31_s18, [#allocation4], %s850_s27, %s850_s27, %s851_s28  }
  0x11   :  { %847 = dma.done.wait [#allocation4], 256  }
  0x12   :  { %848 = vsyncadd [#allocation4], 4294967040  ;;  %vm53_vm0 = vcmask 130048   ;;  %v74_v0 = vld [vmem:[#allocation3] sm:$0xff]  ;;  %v75_v1 = vld [vmem:[#allocation3 + $0x8] sm:$0xff]  ;;  %v852_v22 = vmov 0.0|0.0  }
  0x13   :  { %v52_v2 = vld [vmem:[%s1096_s0] sm:$0xff]  ;;  %v778_v3 = vpack.c.bf16 %v75_v1, %v74_v0  ;;  %v63_v5 = vld [vmem:[%s1097_s1 + $0x8] sm:$0xff]  ;;  %v64_v6 = vld [vmem:[%s1097_s1 + $0x10] sm:$0xff]  ;;  %796 = vmatprep.subr.bf16.mxu0 %v852_v22  ;;  %vm209_vm1 = vcmask 261120   ;;  %vm853_vm2 = vmmov 0   ;;  %vm633_vm3 = vcmask 27648  }
  0x14   :  { %54 = vst.msk [vmem:[#allocation2] sm:$0xff] %vm53_vm0, %v52_v2  ;;  %55 = vst.msk [vmem:[#allocation2 + $0x8] sm:$0xff] %vm53_vm0, %v52_v2  ;;  %v62_v4 = vld [vmem:[%s1097_s1] sm:$0xff]  ;;  %v65_v14 = vld [vmem:[%s1097_s1 + $0x18] sm:$0xff]  ;;  %vm645_vm4 = vcmask 31744  }
  0x15   :  { %56 = vst.msk [vmem:[#allocation2 + $0x10] sm:$0xff] %vm53_vm0, %v52_v2  ;;  %57 = vst.msk [vmem:[#allocation2 + $0x18] sm:$0xff] %vm53_vm0, %v52_v2  ;;  %779 = vmatprep.subr.bf16.mxu1 %v778_v3  ;;  %v201_v16 = vld [vmem:[%s1104_s8] sm:$0xff]  ;;  %v202_v17 = vld [vmem:[%s1104_s8 + $0x8] sm:$0xff] }
  0x16   :  { %781 = vmatpush3.bf16.msra.mxu1 %v778_v3  ;;  %v782_v18 = vpack.c.bf16 %v202_v17, %v201_v16  ;;  %v203_v19 = vld [vmem:[%s1104_s8 + $0x10] sm:$0xff]  ;;  %v204_v20 = vld [vmem:[%s1104_s8 + $0x18] sm:$0xff]  ;;  %v67_v23 = vld [vmem:[%s1098_s2 + $0x8] sm:$0xff]  ;;  %v854_v3 = vmov 0.0  }
  0x17   :  { %v786_v21 = vpack.c.bf16 %v204_v20, %v203_v19  ;;  %v66_v24 = vld [vmem:[%s1098_s2] sm:$0xff]  ;;  %v71_v25 = vld [vmem:[%s1099_s3 + $0x8] sm:$0xff]  ;;  %v69_v31 = vld [vmem:[%s1098_s2 + $0x18] sm:$0xff]  ;;  %753 = vmatprep.mubr.msk.f32.mxu0 %vm853_vm2, %v854_v3 }
  0x18   :  { %783 = vmatprep.subr.bf16.mxu1 %v782_v18  ;;  %v70_v28 = vld [vmem:[%s1099_s3] sm:$0xff]  ;;  %v68_v33 = vld [vmem:[%s1098_s2 + $0x10] sm:$0xff]  ;;  %v73_v35 = vld [vmem:[%s1099_s3 + $0x18] sm:$0xff] }
  0x19   :  { %v189_v38 = vld [vmem:[%s1101_s5] sm:$0xff]  ;;  %v72_v40 = vld [vmem:[%s1099_s3 + $0x10] sm:$0xff]  ;;  %v190_v42 = vld [vmem:[%s1101_s5 + $0x8] sm:$0xff] }
  0x1a   :  { %v192_v47 = vld [vmem:[%s1101_s5 + $0x18] sm:$0xff]  ;;  %v191_v51 = vld [vmem:[%s1101_s5 + $0x10] sm:$0xff]  ;;  %v660_v55 = vld [vmem:[%s1105_s9 + $0x20] sm:$0xff] }
  0x1b   :  { %v58_v7 = vld [vmem:[#allocation2] sm:$0xff]  ;;  %v59_v8 = vld [vmem:[#allocation2 + $0x8] sm:$0xff]  ;;  %v661_v56 = vld [vmem:[%s1105_s9 + $0x28] sm:$0xff] }
  0x1c   :  { %v60_v9 = vld [vmem:[#allocation2 + $0x10] sm:$0xff]  ;;  %v76_v10 = vmul.f32 %v62_v4, %v58_v7  ;;  %v77_v11 = vmul.f32 %v63_v5, %v59_v8  ;;  %v61_v13 = vld [vmem:[#allocation2 + $0x18] sm:$0xff]  ;;  %v791_v57 = vpack.c.bf16 %v661_v56, %v660_v55  ;;  %v319_v58 = vld [vmem:[%s1105_s9] sm:$0xff] }
  0x1d   :  { %v78_v12 = vmul.f32 %v64_v6, %v60_v9  ;;  %v79_v15 = vmul.f32 %v65_v14, %v61_v13  ;;  %v320_v59 = vld [vmem:[%s1105_s9 + $0x8] sm:$0xff]  ;;  %v662_v61 = vld [vmem:[%s1105_s9 + $0x30] sm:$0xff]  ;;  %v663_v62 = vld [vmem:[%s1105_s9 + $0x38] sm:$0xff] }
  0x1e   :  { %714 = vmatprep.mubr.msk.f32.mxu1 %vm53_vm0, %v76_v10  ;;  %v797_v60 = vpack.c.bf16 %v320_v59, %v319_v58  ;;  %v794_v63 = vpack.c.bf16 %v663_v62, %v662_v61  ;;  %v321_v0 = vld [vmem:[%s1105_s9 + $0x10] sm:$0xff]  ;;  %v322_v1 = vld [vmem:[%s1105_s9 + $0x18] sm:$0xff]  ;;  %v194_v4 = vld [vmem:[%s1102_s6 + $0x8] sm:$0xff] }
  0x1f   :  { %715 = vmatmul.mubr.msk.f32.vlgmr.msra.gmra.mrb[0].mxu1 %vm53_vm0, %v77_v11  ;;  %v800_v2 = vpack.c.bf16 %v322_v1, %v321_v0  ;;  %v193_v5 = vld [vmem:[%s1102_s6] sm:$0xff]  ;;  %v198_v6 = vld [vmem:[%s1103_s7 + $0x8] sm:$0xff] }
  0x20   :  { %717 = vmatprep.mubr.msk.f32.mxu1 %vm53_vm0, %v78_v12  ;;  %785 = vmatpush3.bf16.msra.mxu1 %v782_v18  ;;  %v197_v9 = vld [vmem:[%s1103_s7] sm:$0xff]  ;;  %v667_v13 = vld [vmem:[%s1105_s9 + $0x48] sm:$0xff] }
  0x21   :  { %787 = vmatprep.subr.bf16.mxu1 %v786_v21  ;;  %798 = vmatpush3.bf16.msra.mxu0 %v797_v60  ;;  %v666_v12 = vld [vmem:[%s1105_s9 + $0x40] sm:$0xff] }
  0x22   :  { %799 = vmatprep.subr.bf16.mxu0 %v852_v22  ;;  %v803_v20 = vpack.c.bf16 %v667_v13, %v666_v12 }
  0x23   :  { %718 = vmatmul.mubr.msk.f32.gmra.mrb[2].mxu1 %vm53_vm0, %v79_v15  ;;  %v195_v15 = vld [vmem:[%s1102_s6 + $0x10] sm:$0xff] }
  0x24   :  { %789 = vmatpush3.bf16.msra.mxu1 %v786_v21 }
  0x25   :  { %790 = vmatprep.subr.bf16.mxu1 %v852_v22  ;;  %801 = vmatpush3.bf16.msra.mxu0 %v800_v2 }
  0x26   :  { %802 = vmatprep.subr.bf16.mxu0 %v852_v22 }
  0xf2   :  { %v716_v26 = vpop.f32.mrb[0].mxu1 }
  0xf3   :  { %v178_v27 = vmul.f32 %v716_v26, %v67_v23  ;;  %v158_v29 = vpop.f32.mrb[1].mxu1  ;;  %v199_v26 = vld [vmem:[%s1103_s7 + $0x10] sm:$0xff] }
  0xf4   :  { %v177_v30 = vmul.f32 %v158_v29, %v66_v24  ;;  %v668_v24 = vld [vmem:[%s1105_s9 + $0x50] sm:$0xff]  ;;  %v671_v29 = vld [vmem:[%s1105_s9 + $0x60] sm:$0xff] }
  0xf5   :  { %v182_v32 = vadd.f32 %v178_v27, %v71_v25  ;;  %v669_v25 = vld [vmem:[%s1105_s9 + $0x58] sm:$0xff] }
  0xf6   :  { %v181_v34 = vadd.f32 %v177_v30, %v70_v28  ;;  %v719_v36 = vpop.f32.mrb[2].mxu1  ;;  %v806_v27 = vpack.c.bf16 %v669_v25, %v668_v24  ;;  %v672_v30 = vld [vmem:[%s1105_s9 + $0x68] sm:$0xff] }
  0xf7   :  { %v186_v37 = vmax.f32 %v182_v32, 0.0  ;;  %v180_v39 = vmul.f32 %v719_v36, %v69_v31  ;;  %v168_v41 = vpop.f32.mrb[3].mxu1  ;;  %v196_v31 = vld [vmem:[%s1102_s6 + $0x18] sm:$0xff]  ;;  %v809_v32 = vpack.c.bf16 %v672_v30, %v671_v29 }
  0xf8   :  { %v185_v43 = vmax.f32 %v181_v34, 0.0  ;;  %v179_v44 = vmul.f32 %v168_v41, %v68_v33  ;;  %v674_v36 = vld [vmem:[%s1105_s9 + $0x78] sm:$0xff]  ;;  %v632_v41 = vld [vmem:[%s1106_s10] sm:$0xf] }
  0xf9   :  { %v184_v45 = vadd.f32 %v180_v39, %v73_v35  ;;  %v206_v49 = vmul.f32 %v190_v42, %v186_v37  ;;  %v673_v35 = vld [vmem:[%s1105_s9 + $0x70] sm:$0xff]  ;;  %v200_v37 = vld [vmem:[%s1103_s7 + $0x18] sm:$0xff]  ;;  %v634_v42 = vsel %vm633_vm3, %v632_v41, 0.0 }
  0xfa   :  { %v205_v46 = vmul.f32 %v189_v38, %v185_v43  ;;  %v183_v48 = vadd.f32 %v179_v44, %v72_v40  ;;  %v812_v38 = vpack.c.bf16 %v674_v36, %v673_v35  ;;  %v635_v43 = vrot.slane %v634_v42, 4 }
  0xfb   :  { %v188_v50 = vmax.f32 %v184_v45, 0.0 }
  0xfc   :  { %v187_v52 = vmax.f32 %v183_v48, 0.0  ;;  %728 = vmatprep.mubr.msk.f32.mxu1 %vm209_vm1, %v205_v46  ;;  %v636_v44 = vadd.f32 %v635_v43, %v634_v42 }
  0xfd   :  { %v208_v53 = vmul.f32 %v192_v47, %v188_v50  ;;  %729 = vmatmul.mubr.msk.f32.vlgmr.msra.gmra.mrb[4].mxu1 %vm209_vm1, %v206_v49 }
  0xfe   :  { %v207_v54 = vmul.f32 %v191_v51, %v187_v52  ;;  %792 = vmatpush3.bf16.msra.mxu1 %v791_v57  ;;  %v637_v47 = vrot.slane %v636_v44, 2 }
  0xff   :  { %793 = vmatprep.subr.bf16.mxu1 %v852_v22 }
 0x100   :  { %731 = vmatprep.mubr.msk.f32.mxu1 %vm209_vm1, %v207_v54  ;;  %v638_v48 = vadd.f32 %v637_v47, %v636_v44 }
 0x101   :  { %732 = vmatmul.mubr.msk.f32.gmra.mrb[6].mxu1 %vm209_vm1, %v208_v53 }
 0x102   :  { %795 = vmatpush3.bf16.msra.mxu1 %v794_v63  ;;  %742 = vmatprep.mubr.msk.f32.mxu1 %vm853_vm2, %v854_v3  ;;  %v639_v49 = vrot.slane %v638_v48, 1 }
 0x104   :  { %v640_v50 = vadd.f32 %v639_v49, %v638_v48 }
 0x106   :  { %v642_v52 = vmul.f32 0.25, %v640_v50 }
 0x1d0   :  { %v730_v7 = vpop.f32.mrb[4].mxu1 }
 0x1d1   :  { %v308_v8 = vmul.f32 %v730_v7, %v194_v4  ;;  %v288_v10 = vpop.f32.mrb[5].mxu1 }
 0x1d2   :  { %v307_v11 = vmul.f32 %v288_v10, %v193_v5 }
 0x1d3   :  { %v312_v14 = vadd.f32 %v308_v8, %v198_v6 }
 0x1d4   :  { %v311_v16 = vadd.f32 %v307_v11, %v197_v9  ;;  %v733_v17 = vpop.f32.mrb[6].mxu1 }
 0x1d5   :  { %v316_v18 = vmax.f32 %v312_v14, 0.0  ;;  %v298_v19 = vpop.f32.mrb[7].mxu1  ;;  %v310_v33 = vmul.f32 %v733_v17, %v196_v31 }
 0x1d6   :  { %v315_v21 = vmax.f32 %v311_v16, 0.0  ;;  %v309_v23 = vmul.f32 %v298_v19, %v195_v15 }
 0x1d7   :  { %743 = vmatmul.mubr.msk.f32.vlgmr.msra.gmra.mrb[8].mxu1 %vm209_vm1, %v316_v18  ;;  %v314_v39 = vadd.f32 %v310_v33, %v200_v37 }
 0x1d8   :  { %754 = vmatmul.mubr.msk.f32.vlgmr.msra.gmra.mrb[0].mxu0 %vm209_vm1, %v315_v21  ;;  %v313_v28 = vadd.f32 %v309_v23, %v199_v26 }
 0x1d9   :  { %804 = vmatpush3.bf16.msra.mxu0 %v803_v20  ;;  %764 = vmatprep.mubr.msk.f32.mxu0 %vm853_vm2, %v854_v3  ;;  %v318_v40 = vmax.f32 %v314_v39, 0.0 }
 0x1da   :  { %805 = vmatprep.subr.bf16.mxu0 %v852_v22  ;;  %v317_v34 = vmax.f32 %v313_v28, 0.0 }
 0x1dd   :  { %807 = vmatpush3.bf16.msra.mxu0 %v806_v27 }
 0x1de   :  { %808 = vmatprep.subr.bf16.mxu0 %v852_v22 }
 0x1e0   :  { %765 = vmatmul.mubr.msk.f32.vlgmr.msra.gmra.mrb[0].mxu0 %vm209_vm1, %v317_v34 }
 0x1e1   :  { %810 = vmatpush3.bf16.msra.mxu0 %v809_v32  ;;  %775 = vmatprep.mubr.msk.f32.mxu0 %vm853_vm2, %v854_v3 }
 0x1e2   :  { %811 = vmatprep.subr.bf16.mxu0 %v852_v22 }
 0x1e5   :  { %813 = vmatpush3.bf16.msra.mxu0 %v812_v38 }
 0x1e8   :  { %776 = vmatmul.mubr.msk.f32.vlgmr.msra.gmra.mrb[0].mxu0 %vm209_vm1, %v318_v40 }
 0x2aa   :  { %v397_v45 = vpop.f32.mrb[8].mxu1 }
 0x2ab   :  { %v744_v46 = vpop.f32.mrb[9].mxu1 }
 0x2bb   :  { %v627_v51 = vpop.f32.mrb[0].mxu0 }
 0x2bc   :  { %v814_v22 = vadd.f32 %v627_v51, %v397_v45  ;;  %v777_v53 = vpop.f32.mrb[1].mxu0 }
 0x2be   :  { %v643_v54 = vmul.f32 0.25, %v814_v22 }
 0x2c0   :  { %v644_v55 = vadd.f32 %v643_v54, %v642_v52 }
 0x2c2   :  { %646 = vst.msk [vmem:[%s1107_s11] sm:$0xff] %vm645_vm4, %v644_v55 }
 0x2c3   :  { %651 = vsyncpa [#allocation4], 1 }

</bundles_post_ra>
